<compile_context>
chip_gen: v7x
topology: tpu7x:2x2x1
jax: 0.10.0
libtpu: 0.0.40
codegen_flags: <defaults>
</compile_context>

<pallas_src>
import functools

import jax
import jax.numpy as jnp
from jax.experimental import pallas as pl
from jax.experimental.pallas import tpu as pltpu


def _channel_attention_kernel(x_ref, w1_ref, b1_ref, w2_ref, b2_ref,
                              o_ref, acc_ref, *, inv_hw):
    hw_step = pl.program_id(1)

    @pl.when(hw_step == 0)
    def _init():
        acc_ref[...] = jnp.zeros_like(acc_ref)

    # Stream one (TB, C, HW_TILE) slab; keep the partial spatial sum
    # lane-resident so per-step work stays on the VPU.
    x = x_ref[...].astype(jnp.float32)                      # (TB, C, HW_TILE)
    tb, c, hw_tile = x.shape
    acc_ref[...] += jnp.sum(x.reshape(tb, c, hw_tile // 128, 128), axis=2)

    @pl.when(hw_step == pl.num_programs(1) - 1)
    def _finalize():
        # Single cross-lane reduce + 1/(H*W) scale -> global average pool.
        gap = jnp.sum(acc_ref[...], axis=-1) * inv_hw       # (TB, C)
        # 1x1 conv #1:  (TB, C) @ (C, Cr) + b1 -> ReLU
        h = jnp.dot(gap, w1_ref[...],
                    preferred_element_type=jnp.float32) + b1_ref[...]
        h = jnp.maximum(h, 0.0)                             # (TB, Cr)
        # 1x1 conv #2:  (TB, Cr) @ (Cr, C) + b2
        out = jnp.dot(h, w2_ref[...],
                      preferred_element_type=jnp.float32) + b2_ref[...]
        o_ref[...] = out.astype(o_ref.dtype)                # (TB, C) lane-dense


def _tpu_vmem_bytes():
    """Best-effort physical VMEM capacity; conservative default on failure."""
    try:
        info = pltpu.get_tpu_info()
        v = getattr(info, "vmem_capacity_bytes", None)
        if v:
            return int(v)
    except Exception:
        pass
    try:
        kind = jax.devices()[0].device_kind.lower()
    except Exception:
        kind = ""
    if "v5" in kind or "v6" in kind:
        return 128 << 20
    # Unknown / v7x-class: v7x has only 64 MiB VMEM per TensorCore.
    return 64 << 20


def _generation_params():
    vmem = _tpu_vmem_bytes()
    if vmem <= (64 << 20):
        # v7x-class: smaller VMEM, 2 TensorCores, very fast HBM.
        return {"x_slab_budget": 28 << 20, "vmem_soft_cap": 48 << 20,
                "two_tc": True}
    # v5e / v6e-class: 128 MiB physical VMEM, single TensorCore.
    return {"x_slab_budget": 40 << 20, "vmem_soft_cap": 96 << 20,
            "two_tc": False}


def _pick_batch_tile(B, C, *, two_tc):
    # Valid TB for the (TB, C) output block: multiples of 8 dividing B, or the
    # full batch extent.  Cap TB at 64 and keep the (TB, C, 128) f32
    # accumulator scratch under ~8 MiB.
    valid = [t for t in range(8, B + 1, 8) if B % t == 0]
    if B not in valid:
        valid.append(B)

    def ok(t):
        return t <= 64 and t * C * 128 * 4 <= (8 << 20)

    cands = [t for t in valid if ok(t)] or [min(valid)]
    if two_tc:
        # Prefer >= 2 batch grid points so both TensorCores get work.
        multi = [t for t in cands if B // t >= 2]
        if multi:
            return max(multi)
    return max(cands)


def _pick_hw_tiling(HW, TB, C, itemsize, *, slab_budget_bytes, lane_cap):
    """Returns (HW_TILE, HW_pad).  HW_TILE is a multiple of 128 sized so the
    double-buffered x slab stays within slab_budget_bytes; HW_pad is HW rounded
    up so HW_TILE divides it (zero padding in the wrapper)."""
    hw_pad = ((HW + 127) // 128) * 128
    per_lane = 2 * TB * C * itemsize                 # bytes per lane (2 buffers)
    cap = slab_budget_bytes // max(1, per_lane)
    cap = max(128, min(lane_cap, (cap // 128) * 128))
    if hw_pad <= cap:
        return hw_pad, hw_pad
    n_steps = -(-hw_pad // cap)
    tile = ((-(-hw_pad // n_steps) + 127) // 128) * 128
    return tile, tile * n_steps


def channel_attention(x_nchw, w1, b1, w2, b2, *, lane_cap=16384,
                      x_slab_budget_bytes=None):
    """x_nchw: (B, C, H, W). Returns (B, C, 1, 1) like the PyTorch module."""
    B, C, H, W = x_nchw.shape
    Cr = w1.shape[1]
    HW = H * W
    out_dtype = x_nchw.dtype

    gen = _generation_params()
    slab_budget = (x_slab_budget_bytes if x_slab_budget_bytes is not None
                   else gen["x_slab_budget"])

    TB = _pick_batch_tile(B, C, two_tc=gen["two_tc"])
    itemsize = jnp.dtype(x_nchw.dtype).itemsize
    HW_TILE, HW_pad = _pick_hw_tiling(HW, TB, C, itemsize,
                                      slab_budget_bytes=slab_budget,
                                      lane_cap=lane_cap)

    x = x_nchw.reshape(B, C, HW)
    if HW_pad != HW:
        # Zero-pad the spatial axis: zeros don't change the GAP sum and keep
        # every shape on the aligned, pipelined tile path.
        x = jnp.pad(x, ((0, 0), (0, 0), (0, HW_pad - HW)))

    grid = (B // TB, HW_pad // HW_TILE)

    kernel = functools.partial(_channel_attention_kernel,
                               inv_hw=float(1.0 / HW))

    # Rough scheduling hint for XLA around the custom call.
    bytes_x = B * C * HW_pad * itemsize
    bytes_w = int(w1.size * w1.dtype.itemsize + b1.size * b1.dtype.itemsize +
                  w2.size * w2.dtype.itemsize + b2.size * b2.dtype.itemsize)
    bytes_o = B * C * jnp.dtype(out_dtype).itemsize
    cost = pl.CostEstimate(
        flops=int(B * C * HW + 4 * B * C * Cr),
        transcendentals=0,
        bytes_accessed=int(bytes_x + bytes_w + bytes_o),
    )

    # VMEM footprint: double-buffered x slab + double-buffered weights/output
    # + lane-resident accumulator; generation-gated soft cap.
    in_bytes = 2 * TB * C * HW_TILE * itemsize
    acc_bytes = TB * C * 128 * 4
    out_bytes = 2 * TB * C * jnp.dtype(out_dtype).itemsize
    usage = in_bytes + 2 * bytes_w + acc_bytes + out_bytes
    vmem_limit = int(min(gen["vmem_soft_cap"],
                         max(16 << 20, usage + (4 << 20))))

    out = pl.pallas_call(
        kernel,
        out_shape=jax.ShapeDtypeStruct((B, C), out_dtype),
        grid_spec=pltpu.PrefetchScalarGridSpec(
            num_scalar_prefetch=0,
            grid=grid,
            in_specs=[
                pl.BlockSpec((TB, C, HW_TILE), lambda b, s: (b, 0, s)),  # x slab
                pl.BlockSpec((C, Cr), lambda b, s: (0, 0)),              # w1
                pl.BlockSpec((1, Cr), lambda b, s: (0, 0)),              # b1
                pl.BlockSpec((Cr, C), lambda b, s: (0, 0)),              # w2
                pl.BlockSpec((1, C), lambda b, s: (0, 0)),               # b2
            ],
            out_specs=pl.BlockSpec((TB, C), lambda b, s: (b, 0)),
            scratch_shapes=[pltpu.VMEM((TB, C, 128), jnp.float32)],      # GAP acc
        ),
        compiler_params=pltpu.CompilerParams(
            dimension_semantics=("parallel", "arbitrary"),
            vmem_limit_bytes=vmem_limit,
        ),
        cost_estimate=cost,
    )(x, w1, b1, w2, b2)

    return out.reshape(B, C, 1, 1)


def reference(x_nchw, w1, b1, w2, b2):
    gap = jnp.mean(x_nchw.astype(jnp.float32), axis=(2, 3))   # (B, C)
    h = jnp.maximum(gap @ w1 + b1, 0.0)                       # (B, Cr)
    out = h @ w2 + b2                                         # (B, C)
    return out[:, :, None, None]


if __name__ == "__main__":
    # Module config: dim must be divisible by reduction=8
    B, C, H, W = 2, 16, 16, 16
    reduction = 8
    Cr = C // reduction

    key = jax.random.PRNGKey(0)
    kx, k1, k2, k3, k4 = jax.random.split(key, 5)

    x = jax.random.normal(kx, (B, C, H, W), dtype=jnp.float32)

    # Conv2d 1x1 weights stored transposed for right-multiplication:
    # conv weight (out, in, 1, 1) -> (in, out).
    w1 = 0.1 * jax.random.normal(k1, (C, Cr), dtype=jnp.float32)
    b1 = 0.1 * jax.random.normal(k2, (1, Cr), dtype=jnp.float32)
    w2 = 0.1 * jax.random.normal(k3, (Cr, C), dtype=jnp.float32)
    b2 = 0.1 * jax.random.normal(k4, (1, C), dtype=jnp.float32)

    out = jax.block_until_ready(channel_attention(x, w1, b1, w2, b2))
    ref = reference(x, w1, b1, w2, b2)
    assert out.shape == (B, C, 1, 1)
    assert jnp.allclose(out, ref, atol=1e-5, rtol=1e-5), "mismatch vs reference"

    # Larger batch / spatial extent (HW is already a 128 multiple; single step).
    x2 = jax.random.normal(kx, (4, C, 32, 32), dtype=jnp.float32)
    out2 = jax.block_until_ready(channel_attention(x2, w1, b1, w2, b2))
    assert jnp.allclose(out2, reference(x2, w1, b1, w2, b2),
                        atol=1e-5, rtol=1e-5), "mismatch (large HW)"

    # Non-128-multiple H*W (400 -> padded to 512) with a forced tiny lane cap,
    # exercising the multi-step HW reduction + zero-padding path.
    x3 = jax.random.normal(kx, (2, C, 20, 20), dtype=jnp.float32)
    out3 = jax.block_until_ready(
        channel_attention(x3, w1, b1, w2, b2, lane_cap=128))
    assert jnp.allclose(out3, reference(x3, w1, b1, w2, b2),
                        atol=1e-5, rtol=1e-5), "mismatch (padded, tiled HW)"

    print("KERNEL_OK")
</pallas_src>

<mosaic_0001>
module attributes {stable_mosaic.version = 11 : i64} {
  func.func @_channel_attention_kernel(%arg0: i32, %arg1: i32, %arg2: memref<2x16x256xf32, #tpu.memory_space<vmem>>, %arg3: memref<16x2xf32, #tpu.memory_space<vmem>>, %arg4: memref<1x2xf32, #tpu.memory_space<vmem>>, %arg5: memref<2x16xf32, #tpu.memory_space<vmem>>, %arg6: memref<1x16xf32, #tpu.memory_space<vmem>>, %arg7: memref<2x16xf32, #tpu.memory_space<vmem>>, %arg8: memref<2x16x128xf32, #tpu.memory_space<vmem>>) attributes {dimension_semantics = [#tpu.dimension_semantics<parallel>, #tpu.dimension_semantics<arbitrary>], iteration_bounds = array<i64: 1, 1>, scalar_prefetch = 0 : i64, scratch_operands = 1 : i64, tpu.core_type = #tpu.core_type<tc>, window_params = [{transform_indices = @transform_0, window_bounds = array<i64: 2, 16, 256>}, {pipeline_mode = #tpu.pipeline_mode<synchronous>, transform_indices = @transform_1, window_bounds = array<i64: 16, 2>}, {pipeline_mode = #tpu.pipeline_mode<synchronous>, transform_indices = @transform_2, window_bounds = array<i64: 1, 2>}, {pipeline_mode = #tpu.pipeline_mode<synchronous>, transform_indices = @transform_3, window_bounds = array<i64: 2, 16>}, {pipeline_mode = #tpu.pipeline_mode<synchronous>, transform_indices = @transform_4, window_bounds = array<i64: 1, 16>}, {transform_indices = @transform_5, window_bounds = array<i64: 2, 16>}]} {
    %c0_i32 = arith.constant 0 : i32
    %0 = arith.cmpi eq, %arg1, %c0_i32 : i32
    %1 = arith.extui %0 : i1 to i32
    %c0_i32_0 = arith.constant 0 : i32
    %2 = arith.cmpi ne, %1, %c0_i32_0 : i32
    scf.if %2 {
      %cst_11 = arith.constant 0.000000e+00 : f32
      %12 = vector.broadcast %cst_11 : f32 to vector<2x16x128xf32>
      %c0_12 = arith.constant 0 : index
      %c0_13 = arith.constant 0 : index
      %c0_14 = arith.constant 0 : index
      %13 = vector.load %arg8[%c0_12, %c0_13, %c0_14] : memref<2x16x128xf32, #tpu.memory_space<vmem>>, vector<2x16x128xf32>
      tpu.vector_store %arg8[%c0_12, %c0_13, %c0_14], %12 {strides = array<i32>} : memref<2x16x128xf32, #tpu.memory_space<vmem>>, vector<2x16x128xf32>,
    } else {
    }
    %c0 = arith.constant 0 : index
    %c0_1 = arith.constant 0 : index
    %c0_2 = arith.constant 0 : index
    %3 = vector.load %arg2[%c0, %c0_1, %c0_2] : memref<2x16x256xf32, #tpu.memory_space<vmem>>, vector<2x16x256xf32>
    %c0_3 = arith.constant 0 : index
    %c0_4 = arith.constant 0 : index
    %c0_5 = arith.constant 0 : index
    %4 = vector.load %arg8[%c0_3, %c0_4, %c0_5] : memref<2x16x128xf32, #tpu.memory_space<vmem>>, vector<2x16x128xf32>
    %5 = vector.shape_cast %3 : vector<2x16x256xf32> to vector<2x16x2x128xf32>
    %cst = arith.constant dense<0.000000e+00> : vector<2x16x128xf32>
    %6 = vector.multi_reduction <add>, %5, %cst [2] : vector<2x16x2x128xf32> to vector<2x16x128xf32>
    %7 = arith.addf %4, %6 : vector<2x16x128xf32>
    %c0_6 = arith.constant 0 : index
    %c0_7 = arith.constant 0 : index
    %c0_8 = arith.constant 0 : index
    %8 = vector.load %arg8[%c0_6, %c0_7, %c0_8] : memref<2x16x128xf32, #tpu.memory_space<vmem>>, vector<2x16x128xf32>
    tpu.vector_store %arg8[%c0_6, %c0_7, %c0_8], %7 {strides = array<i32>} : memref<2x16x128xf32, #tpu.memory_space<vmem>>, vector<2x16x128xf32>,
    %c0_i32_9 = arith.constant 0 : i32
    %9 = arith.cmpi eq, %arg1, %c0_i32_9 : i32
    %10 = arith.extui %9 : i1 to i32
    %c0_i32_10 = arith.constant 0 : i32
    %11 = arith.cmpi ne, %10, %c0_i32_10 : i32
    scf.if %11 {
      %c0_11 = arith.constant 0 : index
      %c0_12 = arith.constant 0 : index
      %c0_13 = arith.constant 0 : index
      %12 = vector.load %arg8[%c0_11, %c0_12, %c0_13] : memref<2x16x128xf32, #tpu.memory_space<vmem>>, vector<2x16x128xf32>
      %cst_14 = arith.constant dense<0.000000e+00> : vector<2x16xf32>
      %13 = vector.multi_reduction <add>, %12, %cst_14 [2] : vector<2x16x128xf32> to vector<2x16xf32>
      %cst_15 = arith.constant 3.906250e-03 : f32
      %14 = vector.broadcast %cst_15 : f32 to vector<2x16xf32>
      %15 = arith.mulf %13, %14 : vector<2x16xf32>
      %c0_16 = arith.constant 0 : index
      %c0_17 = arith.constant 0 : index
      %16 = vector.load %arg3[%c0_16, %c0_17] : memref<16x2xf32, #tpu.memory_space<vmem>>, vector<16x2xf32>
      %cst_18 = arith.constant dense<0.000000e+00> : vector<2x2xf32>
      %17 = tpu.matmul %15, %16, %cst_18 {dimension_numbers = #tpu.dot_dimension_numbers<[1], [0], [0], [1], [0, 0, 1, 1], [], []>} : vector<2x16xf32>, vector<16x2xf32>, vector<2x2xf32> -> vector<2x2xf32>
      %c0_19 = arith.constant 0 : index
      %c0_20 = arith.constant 0 : index
      %18 = vector.load %arg4[%c0_19, %c0_20] : memref<1x2xf32, #tpu.memory_space<vmem>>, vector<1x2xf32>
      %19 = vector.broadcast %18 : vector<1x2xf32> to vector<2x2xf32>
      %20 = arith.addf %17, %19 : vector<2x2xf32>
      %cst_21 = arith.constant 0.000000e+00 : f32
      %21 = vector.broadcast %cst_21 : f32 to vector<2x2xf32>
      %22 = arith.maximumf %20, %21 : vector<2x2xf32>
      %c0_22 = arith.constant 0 : index
      %c0_23 = arith.constant 0 : index
      %23 = vector.load %arg5[%c0_22, %c0_23] : memref<2x16xf32, #tpu.memory_space<vmem>>, vector<2x16xf32>
      %cst_24 = arith.constant dense<0.000000e+00> : vector<2x16xf32>
      %24 = tpu.matmul %22, %23, %cst_24 {dimension_numbers = #tpu.dot_dimension_numbers<[1], [0], [0], [1], [0, 0, 1, 1], [], []>} : vector<2x2xf32>, vector<2x16xf32>, vector<2x16xf32> -> vector<2x16xf32>
      %c0_25 = arith.constant 0 : index
      %c0_26 = arith.constant 0 : index
      %25 = vector.load %arg6[%c0_25, %c0_26] : memref<1x16xf32, #tpu.memory_space<vmem>>, vector<1x16xf32>
      %26 = vector.broadcast %25 : vector<1x16xf32> to vector<2x16xf32>
      %27 = arith.addf %24, %26 : vector<2x16xf32>
      %c0_27 = arith.constant 0 : index
      %c0_28 = arith.constant 0 : index
      %28 = vector.load %arg7[%c0_27, %c0_28] : memref<2x16xf32, #tpu.memory_space<vmem>>, vector<2x16xf32>
      tpu.vector_store %arg7[%c0_27, %c0_28], %27 {strides = array<i32>} : memref<2x16xf32, #tpu.memory_space<vmem>>, vector<2x16xf32>,
    } else {
    }
    return
  }
  func.func @transform_0(%arg0: i32, %arg1: i32) -> (i32, i32, i32) {
    %c0_i32 = arith.constant 0 : i32
    %c0_i32_0 = arith.constant 0 : i32
    return %arg0, %c0_i32, %arg1 : i32, i32, i32
  }
  func.func @transform_1(%arg0: i32, %arg1: i32) -> (i32, i32) {
    %c0_i32 = arith.constant 0 : i32
    %c0_i32_0 = arith.constant 0 : i32
    %c0_i32_1 = arith.constant 0 : i32
    return %c0_i32, %c0_i32_0 : i32, i32
  }
  func.func @transform_2(%arg0: i32, %arg1: i32) -> (i32, i32) {
    %c0_i32 = arith.constant 0 : i32
    %c0_i32_0 = arith.constant 0 : i32
    %c0_i32_1 = arith.constant 0 : i32
    return %c0_i32, %c0_i32_0 : i32, i32
  }
  func.func @transform_3(%arg0: i32, %arg1: i32) -> (i32, i32) {
    %c0_i32 = arith.constant 0 : i32
    %c0_i32_0 = arith.constant 0 : i32
    %c0_i32_1 = arith.constant 0 : i32
    return %c0_i32, %c0_i32_0 : i32, i32
  }
  func.func @transform_4(%arg0: i32, %arg1: i32) -> (i32, i32) {
    %c0_i32 = arith.constant 0 : i32
    %c0_i32_0 = arith.constant 0 : i32
    %c0_i32_1 = arith.constant 0 : i32
    return %c0_i32, %c0_i32_0 : i32, i32
  }
  func.func @transform_5(%arg0: i32, %arg1: i32) -> (i32, i32) {
    %c0_i32 = arith.constant 0 : i32
    %c0_i32_0 = arith.constant 0 : i32
    return %arg0, %c0_i32 : i32, i32
  }
}

</mosaic_0001>

<bundles_post_ra>
// kernel: tpu_custom_call.1
= control target key start
LH: loop header
LB: loop body
LE: loop exit
PB: predicated region body
PF: predicated region fallthrough
CT: control target
= control target key end

     0   :  { %10 = vsyncpa [#allocation4], 0  ;;  %s1179_s0 = inlined_call_operand.hbm [shape: f32[2,16,256], index: 0, kind: input, shape index: {}]   ;;  %s1180_s1 = inlined_call_operand.vmem [shape: f32[16,2], index: 1, kind: input, shape index: {}]   ;;  %s1181_s2 = inlined_call_operand.vmem [shape: f32[1,2], index: 2, kind: input, shape index: {}]   ;;  %s1182_s3 = inlined_call_operand.vmem [shape: f32[2,16], index: 3, kind: input, shape index: {}]   ;;  %s1183_s4 = inlined_call_operand.vmem [shape: f32[1,16], index: 4, kind: input, shape index: {}]   ;;  %s1184_s5 = inlined_call_operand.hbm [shape: f32[2,16], index: 5, kind: output, shape index: {}]  }
   0x1   :  { %11 = vsyncpa [#allocation5], 0  ;;  %s936_s18 = smov [#allocation3]   ;;  %s888_s22 = scalar_lea.hbm %s1179_s0, 1024 }
   0x2   :  { %s17_s19 = sshll.u32 %s936_s18, 4  ;;  %p889_p0 = scmp.ne.s32.totalorder %s1179_s0, %s888_s22  ;;  %s18_s19 = int_to_ptr.vmem [resolvable:$true] %s17_s19 }
   0x3   :  { %p892_p1 = scmp.lt.u32.totalorder %s888_s22, %s1179_s0 }
   0x5   :  { %p894_p2 = pnand %p892_p1, %p889_p0 }
   0x7   :  { %897 = shalt.err (!%p894_p2)
}
   0x8   :  { %s898_s27 = scalar_lea.vmem %s18_s19, 1024  ;;  %p903_p4 = scmp.lt.s32.totalorder %s18_s19, %s18_s19 }
   0x9   :  { %p899_p3 = scmp.ne.s32.totalorder %s18_s19, %s898_s27  ;;  %p904_p5 = scmp.lt.s32.totalorder %s898_s27, %s898_s27 }
   0xb   :  { %p905_p6 = por %p904_p5, %p903_p4 }
   0xd   :  { %p906_p7 = pnand %p905_p6, %p899_p3 }
   0xf   :  { %909 = shalt.err (!%p906_p7)
}
  0x10   :  { %s937_s28 = smov 256   ;;  %s938_s29 = smov 16  }
  0x11   :  { %23 = dma.hbm_to_vmem [thread:$0]  %s1179_s0, 1024, %s18_s19, [#allocation4], %s937_s28, %s937_s28, %s938_s29  }
  0x12   :  { %932 = dma.done.wait [#allocation4], 1024  }
  0x13   :  { %933 = vsyncadd [#allocation4], 4294966272  ;;  %v59_v0 = vlaneseq  ;;  %v939_v1 = vmov 1983009808   ;;  %v940_v3 = vmov 0.0   ;;  %v47_v10 = vld [vmem:[#allocation3 + $0x20] sm:$0xff] }
  0x14   :  { %v57_v2 = vunpack.c.l.s4 %v939_v1  ;;  %871 = vmatprep.subr.mxu1 %v940_v3  ;;  %v941_v5 = vmov 1934713408   ;;  %v48_v11 = vld [vmem:[#allocation3 + $0x28] sm:$0xff]  ;;  %vm319_vm0 = vcmask 1041408   ;;  %v43_v13 = vld [vmem:[#allocation3] sm:$0xff]  ;;  %v187_v14 = vcombine.high %v47_v10, %v940_v3  ;;  %s944_s15 = smov [#allocation6]  }
  0x15   :  { %v989_v4 = vshrl.u32 %v59_v0, 7  ;;  %v88_v6 = vunpack.c.l.s4 %v941_v5  ;;  %v202_v16 = vcombine.high %v48_v11, %v940_v3  ;;  %v44_v18 = vld [vmem:[#allocation3 + $0x8] sm:$0xff]  ;;  %v55_v19 = vcombine.high %v43_v13, %v940_v3  ;;  %s845_s16 = sshll.u32 %s944_s15, 4  ;;  %s846_s16 = int_to_ptr.vmem [resolvable:$true] %s845_s16 }
  0x16   :  { %v58_v7 = vunpack.c.0.s8 %v57_v2  ;;  %v70_v21 = vcombine.high %v44_v18, %v940_v3  ;;  %vm576_vm1 = vcmask 1041409   ;;  %vm578_vm2 = vcmask 1042434   ;;  %p915_p9 = scmp.lt.s32.totalorder %s846_s16, %s846_s16 }
  0x17   :  { %v89_v8 = vunpack.c.0.s8 %v88_v6  ;;  %vm580_vm3 = vcmask 1043459   ;;  %vm582_vm4 = vcmask 1044484   ;;  %vm584_vm5 = vcmask 1045509  }
  0x18   :  { %v992_v9 = vsub.s32 %v58_v7, %v989_v4  ;;  %vm586_vm6 = vcmask 1046534   ;;  %vm588_vm7 = vcmask 1047559   ;;  %vm943_vm8 = vmmov 0  }
  0x19   :  { %v995_v12 = vsub.s32 %v89_v8, %v989_v4  ;;  %868 = vmatprep.mubr.msk.f32.mxu0 %vm943_vm8, %v940_v3  ;;  %873 = vmatprep.mubr.msk.f32.mxu1 %vm943_vm8, %v940_v3  ;;  %vm666_vm9 = vcmask 130112   ;;  %vm678_vm10 = vcmask 130048   ;;  %vm760_vm11 = vcmask 15360  }
  0x1a   :  { %v194_v15 = vrot.slane %v47_v10, %v992_v9  ;;  %v209_v17 = vrot.slane %v48_v11, %v992_v9  ;;  %v62_v20 = vrot.slane %v43_v13, %v992_v9  ;;  %v77_v22 = vrot.slane %v44_v18, %v992_v9 }
  0x1b   :  { %v201_v23 = vrot.slane %v187_v14, %v992_v9  ;;  %v216_v24 = vrot.slane %v202_v16, %v992_v9  ;;  %v69_v27 = vrot.slane %v55_v19, %v992_v9  ;;  %v84_v28 = vrot.slane %v70_v21, %v992_v9 }
  0x1c   :  { %v217_v25 = vcombine.low %v194_v15, %v209_v17  ;;  %v218_v26 = vcombine.high %v194_v15, %v209_v17  ;;  %v85_v29 = vcombine.low %v62_v20, %v77_v22  ;;  %v86_v30 = vcombine.high %v62_v20, %v77_v22 }
  0x1d   :  { %v233_v33 = vcombine.low %v201_v23, %v216_v24  ;;  %v234_v34 = vcombine.high %v201_v23, %v216_v24  ;;  %v101_v37 = vcombine.low %v69_v27, %v84_v28  ;;  %v102_v38 = vcombine.high %v69_v27, %v84_v28 }
  0x1e   :  { %v225_v31 = vrot.slane %v217_v25, %v995_v12  ;;  %v232_v32 = vrot.slane %v218_v26, %v995_v12  ;;  %v1012_v35 = vrot.slane %v85_v29, %v995_v12  ;;  %v1015_v36 = vrot.slane %v86_v30, %v995_v12 }
  0x1f   :  { %v241_v39 = vrot.slane %v233_v33, %v995_v12  ;;  %v248_v40 = vrot.slane %v234_v34, %v995_v12  ;;  %v1024_v45 = vrot.slane %v101_v37, %v995_v12  ;;  %v1027_v46 = vrot.slane %v102_v38, %v995_v12 }
  0x20   :  { %v249_v41 = vcombine.high %v225_v31, %v940_v3  ;;  %v250_v42 = vcombine.high %v232_v32, %v940_v3  ;;  %v432_v43 = vsel %vm319_vm0, %v225_v31, 0.0  ;;  %v446_v44 = vsel %vm319_vm0, %v232_v32, 0.0 }
  0x21   :  { %v251_v47 = vcombine.high %v241_v39, %v940_v3  ;;  %v252_v48 = vcombine.high %v248_v40, %v940_v3  ;;  %v433_v49 = vrot.slane %v432_v43, 4  ;;  %v447_v52 = vrot.slane %v446_v44, 4 }
  0x22   :  { %v439_v50 = vsel %vm319_vm0, %v249_v41, 0.0  ;;  %v453_v53 = vsel %vm319_vm0, %v250_v42, 0.0  ;;  %v460_v54 = vsel %vm319_vm0, %v241_v39, 0.0  ;;  %v474_v62 = vsel %vm319_vm0, %v248_v40, 0.0 }
  0x23   :  { %v440_v51 = vrot.slane %v439_v50, 4  ;;  %v434_v55 = vadd.f32 %v433_v49, %v432_v43  ;;  %v454_v56 = vrot.slane %v453_v53, 4  ;;  %v461_v57 = vrot.slane %v460_v54, 4 }
  0x24   :  { %v467_v58 = vsel %vm319_vm0, %v251_v47, 0.0  ;;  %v448_v60 = vadd.f32 %v447_v52, %v446_v44  ;;  %v475_v5 = vrot.slane %v474_v62, 4  ;;  %v481_v10 = vsel %vm319_vm0, %v252_v48, 0.0 }
  0x25   :  { %v441_v59 = vadd.f32 %v440_v51, %v439_v50  ;;  %v468_v61 = vrot.slane %v467_v58, 4  ;;  %v435_v63 = vrot.slane %v434_v55, 2  ;;  %v455_v1 = vadd.f32 %v454_v56, %v453_v53 }
  0x26   :  { %v462_v2 = vadd.f32 %v461_v57, %v460_v54  ;;  %v449_v7 = vrot.slane %v448_v60, 2  ;;  %v476_v15 = vadd.f32 %v475_v5, %v474_v62  ;;  %v482_v19 = vrot.slane %v481_v10, 4 }
  0x27   :  { %v442_v6 = vrot.slane %v441_v59, 2  ;;  %v469_v8 = vadd.f32 %v468_v61, %v467_v58  ;;  %v436_v11 = vadd.f32 %v435_v63, %v434_v55  ;;  %v456_v13 = vrot.slane %v455_v1, 2 }
  0x28   :  { %v463_v14 = vrot.slane %v462_v2, 2  ;;  %v450_v17 = vadd.f32 %v449_v7, %v448_v60  ;;  %v477_v23 = vrot.slane %v476_v15, 2  ;;  %v483_v27 = vadd.f32 %v482_v19, %v481_v10 }
  0x29   :  { %v443_v16 = vadd.f32 %v442_v6, %v441_v59  ;;  %v470_v18 = vrot.slane %v469_v8, 2  ;;  %v437_v20 = vrot.slane %v436_v11, 1  ;;  %v457_v21 = vadd.f32 %v456_v13, %v455_v1 }
  0x2a   :  { %v464_v22 = vadd.f32 %v463_v14, %v462_v2  ;;  %v451_v25 = vrot.slane %v450_v17, 1  ;;  %v478_v31 = vadd.f32 %v477_v23, %v476_v15  ;;  %v484_v37 = vrot.slane %v483_v27, 2 }
  0x2b   :  { %v444_v24 = vrot.slane %v443_v16, 1  ;;  %v471_v26 = vadd.f32 %v470_v18, %v469_v8  ;;  %v438_v28 = vadd.f32 %v437_v20, %v436_v11  ;;  %v458_v29 = vrot.slane %v457_v21, 1 }
  0x2c   :  { %v465_v30 = vrot.slane %v464_v22, 1  ;;  %v452_v33 = vadd.f32 %v451_v25, %v450_v17  ;;  %v479_v40 = vrot.slane %v478_v31, 1  ;;  %v117_v41 = vcombine.high %v1012_v35, %v940_v3 }
  0x2d   :  { %v445_v32 = vadd.f32 %v444_v24, %v443_v16  ;;  %v472_v34 = vrot.slane %v471_v26, 1  ;;  %v459_v38 = vadd.f32 %v458_v29, %v457_v21  ;;  %v485_v43 = vadd.f32 %v484_v37, %v483_v27 }
  0x2e   :  { %v466_v39 = vadd.f32 %v465_v30, %v464_v22  ;;  %v118_v47 = vcombine.high %v1015_v36, %v940_v3  ;;  %v480_v48 = vadd.f32 %v479_v40, %v478_v31  ;;  %v119_v50 = vcombine.high %v1024_v45, %v940_v3 }
  0x2f   :  { %v473_v42 = vadd.f32 %v472_v34, %v471_v26  ;;  %v597_v44 = vsel %vm576_vm1, %v445_v32, %v438_v28  ;;  %v120_v51 = vcombine.high %v1027_v46, %v940_v3  ;;  %v486_v52 = vrot.slane %v485_v43, 1 }
  0x30   :  { %v598_v49 = vsel %vm578_vm2, %v452_v33, %v597_v44  ;;  %v320_v54 = vsel %vm319_vm0, %v1012_v35, 0.0  ;;  %v327_v55 = vsel %vm319_vm0, %v117_v41, 0.0  ;;  %v334_v59 = vsel %vm319_vm0, %v1015_v36, 0.0 }
  0x31   :  { %v599_v53 = vsel %vm580_vm3, %v459_v38, %v598_v49  ;;  %v321_v57 = vrot.slane %v320_v54, 4  ;;  %v328_v58 = vrot.slane %v327_v55, 4  ;;  %v487_v60 = vadd.f32 %v486_v52, %v485_v43  ;;  %v49_v43 = vld [vmem:[#allocation3 + $0x30] sm:$0xff] }
  0x32   :  { %v600_v56 = vsel %vm582_vm4, %v466_v39, %v599_v53  ;;  %v335_v62 = vrot.slane %v334_v59, 4  ;;  %v341_v63 = vsel %vm319_vm0, %v118_v47, 0.0  ;;  %v348_v8 = vsel %vm319_vm0, %v1024_v45, 0.0 }
  0x33   :  { %v601_v61 = vsel %vm584_vm5, %v473_v42, %v600_v56  ;;  %v322_v2 = vadd.f32 %v321_v57, %v320_v54  ;;  %v329_v5 = vadd.f32 %v328_v58, %v327_v55  ;;  %v342_v35 = vrot.slane %v341_v63, 4  ;;  %v50_v54 = vld [vmem:[#allocation3 + $0x38] sm:$0xff]  ;;  %v45_v55 = vld [vmem:[#allocation3 + $0x10] sm:$0xff] }
  0x34   :  { %v602_v1 = vsel %vm586_vm6, %v480_v48, %v601_v61  ;;  %v336_v7 = vadd.f32 %v335_v62, %v334_v59  ;;  %v355_v10 = vsel %vm319_vm0, %v119_v50, 0.0  ;;  %v349_v14 = vrot.slane %v348_v8, 4 }
  0x35   :  { %v603_v6 = vsel %vm588_vm7, %v487_v60, %v602_v1  ;;  %v323_v36 = vrot.slane %v322_v2, 2  ;;  %v330_v11 = vrot.slane %v329_v5, 2  ;;  %v343_v13 = vadd.f32 %v342_v35, %v341_v63 }
  0x36   :  { %634 = vadd.xlane.f32.xlu1 %v603_v6  ;;  %v337_v15 = vrot.slane %v336_v7, 2  ;;  %v356_v16 = vrot.slane %v355_v10, 4  ;;  %v362_v17 = vsel %vm319_vm0, %v1027_v46, 0.0  ;;  %v369_v18 = vsel %vm319_vm0, %v120_v51, 0.0 }
  0x37   :  { %v324_v19 = vadd.f32 %v323_v36, %v322_v2  ;;  %v331_v20 = vadd.f32 %v330_v11, %v329_v5  ;;  %v344_v21 = vrot.slane %v343_v13, 2  ;;  %v350_v22 = vadd.f32 %v349_v14, %v348_v8  ;;  %v46_v5 = vld [vmem:[#allocation3 + $0x18] sm:$0xff] }
  0x38   :  { %v338_v23 = vadd.f32 %v337_v15, %v336_v7  ;;  %v357_v45 = vadd.f32 %v356_v16, %v355_v10  ;;  %v363_v24 = vrot.slane %v362_v17, 4  ;;  %v370_v25 = vrot.slane %v369_v18, 4 }
  0x39   :  { %v325_v26 = vrot.slane %v324_v19, 1  ;;  %v332_v27 = vrot.slane %v331_v20, 1  ;;  %v345_v28 = vadd.f32 %v344_v21, %v343_v13  ;;  %v351_v29 = vrot.slane %v350_v22, 2 }
  0x3a   :  { %v339_v30 = vrot.slane %v338_v23, 1  ;;  %v358_v31 = vrot.slane %v357_v45, 2  ;;  %v364_v32 = vadd.f32 %v363_v24, %v362_v17  ;;  %v371_v33 = vadd.f32 %v370_v25, %v369_v18 }
  0x3b   :  { %v326_v34 = vadd.f32 %v325_v26, %v324_v19  ;;  %v333_v46 = vadd.f32 %v332_v27, %v331_v20  ;;  %v346_v37 = vrot.slane %v345_v28, 1  ;;  %v352_v38 = vadd.f32 %v351_v29, %v350_v22 }
  0x3c   :  { %v340_v39 = vadd.f32 %v339_v30, %v338_v23  ;;  %v359_v40 = vadd.f32 %v358_v31, %v357_v45  ;;  %v365_v41 = vrot.slane %v364_v32, 2  ;;  %v372_v42 = vrot.slane %v371_v33, 2 }
  0x3d   :  { %v347_v44 = vadd.f32 %v346_v37, %v345_v28  ;;  %v353_v47 = vrot.slane %v352_v38, 1  ;;  %v577_v48 = vsel %vm576_vm1, %v333_v46, %v326_v34  ;;  %v253_v49 = vcombine.high %v49_v43, %v940_v3 }
  0x3e   :  { %v360_v50 = vrot.slane %v359_v40, 1  ;;  %v366_v51 = vadd.f32 %v365_v41, %v364_v32  ;;  %v373_v52 = vadd.f32 %v372_v42, %v371_v33  ;;  %v579_v53 = vsel %vm578_vm2, %v340_v39, %v577_v48 }
  0x3f   :  { %v354_v56 = vadd.f32 %v353_v47, %v352_v38  ;;  %v581_v57 = vsel %vm580_vm3, %v347_v44, %v579_v53  ;;  %v260_v58 = vrot.slane %v49_v43, %v992_v9  ;;  %v267_v59 = vrot.slane %v253_v49, %v992_v9 }
  0x40   :  { %v361_v60 = vadd.f32 %v360_v50, %v359_v40  ;;  %v367_v61 = vrot.slane %v366_v51, 1  ;;  %v374_v62 = vrot.slane %v373_v52, 1  ;;  %v268_v63 = vcombine.high %v50_v54, %v940_v3 }
  0x41   :  { %v583_v1 = vsel %vm582_vm4, %v354_v56, %v581_v57  ;;  %v275_v2 = vrot.slane %v50_v54, %v992_v9  ;;  %v121_v35 = vcombine.high %v45_v55, %v940_v3  ;;  %v1075_v6 = vrot.slane %v45_v55, %v992_v9 }
  0x42   :  { %v368_v7 = vadd.f32 %v367_v61, %v366_v51  ;;  %v375_v8 = vadd.f32 %v374_v62, %v373_v52  ;;  %v585_v10 = vsel %vm584_vm5, %v361_v60, %v583_v1  ;;  %v282_v36 = vrot.slane %v268_v63, %v992_v9 }
  0x43   :  { %v283_v11 = vcombine.low %v260_v58, %v275_v2  ;;  %v284_v13 = vcombine.high %v260_v58, %v275_v2  ;;  %v1080_v14 = vrot.slane %v121_v35, %v992_v9  ;;  %v136_v15 = vcombine.high %v46_v5, %v940_v3 }
  0x44   :  { %v587_v16 = vsel %vm586_vm6, %v368_v7, %v585_v10  ;;  %v299_v17 = vcombine.low %v267_v59, %v282_v36  ;;  %v300_v18 = vcombine.high %v267_v59, %v282_v36  ;;  %v1085_v19 = vrot.slane %v46_v5, %v992_v9 }
  0x45   :  { %v589_v20 = vsel %vm588_vm7, %v375_v8, %v587_v16  ;;  %v291_v21 = vrot.slane %v283_v11, %v995_v12  ;;  %v298_v22 = vrot.slane %v284_v13, %v995_v12  ;;  %v1091_v23 = vrot.slane %v136_v15, %v992_v9 }
  0x46   :  { %630 = vadd.xlane.f32.xlu0 %v589_v20  ;;  %v307_v45 = vrot.slane %v299_v17, %v995_v12  ;;  %v314_v24 = vrot.slane %v300_v18, %v995_v12  ;;  %v151_v25 = vcombine.low %v1075_v6, %v1085_v19  ;;  %v152_v26 = vcombine.high %v1075_v6, %v1085_v19 }
  0x47   :  { %v315_v27 = vcombine.high %v291_v21, %v940_v3  ;;  %v316_v28 = vcombine.high %v298_v22, %v940_v3  ;;  %v488_v29 = vsel %vm319_vm0, %v291_v21, 0.0  ;;  %v502_v9 = vsel %vm319_vm0, %v298_v22, 0.0 }
  0x48   :  { %v317_v30 = vcombine.high %v307_v45, %v940_v3  ;;  %v318_v31 = vcombine.high %v314_v24, %v940_v3  ;;  %v489_v32 = vrot.slane %v488_v29, 4  ;;  %v503_v33 = vrot.slane %v502_v9, 4 }
  0x49   :  { %v495_v34 = vsel %vm319_vm0, %v315_v27, 0.0  ;;  %v509_v46 = vsel %vm319_vm0, %v316_v28, 0.0  ;;  %v516_v37 = vsel %vm319_vm0, %v307_v45, 0.0  ;;  %v530_v38 = vsel %vm319_vm0, %v314_v24, 0.0 }
  0x4a   :  { %v490_v39 = vadd.f32 %v489_v32, %v488_v29  ;;  %v496_v40 = vrot.slane %v495_v34, 4  ;;  %v504_v41 = vadd.f32 %v503_v33, %v502_v9  ;;  %v510_v42 = vrot.slane %v509_v46, 4 }
  0x4b   :  { %v517_v43 = vrot.slane %v516_v37, 4  ;;  %v523_v44 = vsel %vm319_vm0, %v317_v30, 0.0  ;;  %v531_v47 = vrot.slane %v530_v38, 4  ;;  %v537_v48 = vsel %vm319_vm0, %v318_v31, 0.0 }
  0x4c   :  { %v491_v49 = vrot.slane %v490_v39, 2  ;;  %v497_v50 = vadd.f32 %v496_v40, %v495_v34  ;;  %v505_v51 = vrot.slane %v504_v41, 2  ;;  %v511_v52 = vadd.f32 %v510_v42, %v509_v46 }
  0x4d   :  { %v518_v53 = vadd.f32 %v517_v43, %v516_v37  ;;  %v524_v54 = vrot.slane %v523_v44, 4  ;;  %v532_v55 = vadd.f32 %v531_v47, %v530_v38  ;;  %v538_v56 = vrot.slane %v537_v48, 4 }
  0x4e   :  { %v492_v57 = vadd.f32 %v491_v49, %v490_v39  ;;  %v498_v58 = vrot.slane %v497_v50, 2  ;;  %v506_v59 = vadd.f32 %v505_v51, %v504_v41  ;;  %v512_v60 = vrot.slane %v511_v52, 2 }
  0x4f   :  { %v519_v61 = vrot.slane %v518_v53, 2  ;;  %v525_v62 = vadd.f32 %v524_v54, %v523_v44  ;;  %v533_v63 = vrot.slane %v532_v55, 2  ;;  %v539_v1 = vadd.f32 %v538_v56, %v537_v48 }
  0x50   :  { %v493_v2 = vrot.slane %v492_v57, 1  ;;  %v499_v5 = vadd.f32 %v498_v58, %v497_v50  ;;  %v507_v35 = vrot.slane %v506_v59, 1  ;;  %v513_v6 = vadd.f32 %v512_v60, %v511_v52 }
  0x51   :  { %v520_v7 = vadd.f32 %v519_v61, %v518_v53  ;;  %v526_v8 = vrot.slane %v525_v62, 2  ;;  %v534_v10 = vadd.f32 %v533_v63, %v532_v55  ;;  %v540_v36 = vrot.slane %v539_v1, 2 }
  0x52   :  { %v494_v11 = vadd.f32 %v493_v2, %v492_v57  ;;  %v500_v13 = vrot.slane %v499_v5, 1  ;;  %v508_v15 = vadd.f32 %v507_v35, %v506_v59  ;;  %v514_v16 = vrot.slane %v513_v6, 1 }
  0x53   :  { %v521_v17 = vrot.slane %v520_v7, 1  ;;  %v527_v18 = vadd.f32 %v526_v8, %v525_v62  ;;  %v535_v19 = vrot.slane %v534_v10, 1  ;;  %v541_v20 = vadd.f32 %v540_v36, %v539_v1 }
  0x54   :  { %v501_v21 = vadd.f32 %v500_v13, %v499_v5  ;;  %v515_v22 = vadd.f32 %v514_v16, %v513_v6  ;;  %v159_v45 = vrot.slane %v151_v25, %v995_v12  ;;  %v166_v24 = vrot.slane %v152_v26, %v995_v12 }
  0x55   :  { %v522_v27 = vadd.f32 %v521_v17, %v520_v7  ;;  %v528_v28 = vrot.slane %v527_v18, 1  ;;  %v536_v29 = vadd.f32 %v535_v19, %v534_v10  ;;  %v542_v9 = vrot.slane %v541_v20, 1 }
  0x56   :  { %v604_v30 = vsel %vm576_vm1, %v501_v21, %v494_v11  ;;  %v167_v31 = vcombine.low %v1080_v14, %v1091_v23  ;;  %v168_v32 = vcombine.high %v1080_v14, %v1091_v23  ;;  %v183_v33 = vcombine.high %v159_v45, %v940_v3 }
  0x57   :  { %v529_v34 = vadd.f32 %v528_v28, %v527_v18  ;;  %v543_v46 = vadd.f32 %v542_v9, %v541_v20  ;;  %v605_v25 = vsel %vm578_vm2, %v508_v15, %v604_v30  ;;  %v184_v26 = vcombine.high %v166_v24, %v940_v3 }
  0x58   :  { %v606_v37 = vsel %vm580_vm3, %v515_v22, %v605_v25  ;;  %v175_v38 = vrot.slane %v167_v31, %v995_v12  ;;  %v182_v39 = vrot.slane %v168_v32, %v995_v12  ;;  %v376_v40 = vsel %vm319_vm0, %v159_v45, 0.0 }
  0x59   :  { %v607_v41 = vsel %vm582_vm4, %v522_v27, %v606_v37  ;;  %v377_v42 = vrot.slane %v376_v40, 4  ;;  %v383_v14 = vsel %vm319_vm0, %v183_v33, 0.0  ;;  %v390_v23 = vsel %vm319_vm0, %v166_v24, 0.0 }
  0x5a   :  { %v608_v43 = vsel %vm584_vm5, %v529_v34, %v607_v41  ;;  %v185_v44 = vcombine.high %v175_v38, %v940_v3  ;;  %v186_v47 = vcombine.high %v182_v39, %v940_v3  ;;  %v384_v48 = vrot.slane %v383_v14, 4 }
  0x5b   :  { %v609_v49 = vsel %vm586_vm6, %v536_v29, %v608_v43  ;;  %v378_v50 = vadd.f32 %v377_v42, %v376_v40  ;;  %v391_v12 = vrot.slane %v390_v23, 4  ;;  %v397_v51 = vsel %vm319_vm0, %v184_v26, 0.0 }
  0x5c   :  { %v610_v52 = vsel %vm588_vm7, %v543_v46, %v609_v49  ;;  %v385_v53 = vadd.f32 %v384_v48, %v383_v14  ;;  %v398_v54 = vrot.slane %v397_v51, 4  ;;  %v404_v55 = vsel %vm319_vm0, %v175_v38, 0.0  ;;  %v642_v48 = vld [vmem:[%s1180_s1] sm:$0xff]  ;;  %v643_v49 = vld [vmem:[%s1180_s1 + $0x8] sm:$0xff] }
  0x5d   :  { %636 = vadd.xlane.f32.xlu1 %v610_v52  ;;  %v379_v56 = vrot.slane %v378_v50, 2  ;;  %v392_v57 = vadd.f32 %v391_v12, %v390_v23  ;;  %v405_v58 = vrot.slane %v404_v55, 4  ;;  %v411_v59 = vsel %vm319_vm0, %v185_v44, 0.0 }
  0x5e   :  { %v386_v60 = vrot.slane %v385_v53, 2  ;;  %v399_v61 = vadd.f32 %v398_v54, %v397_v51  ;;  %v412_v62 = vrot.slane %v411_v59, 4  ;;  %v418_v63 = vsel %vm319_vm0, %v182_v39, 0.0 }
  0x5f   :  { %v380_v1 = vadd.f32 %v379_v56, %v378_v50  ;;  %v393_v2 = vrot.slane %v392_v57, 2  ;;  %v406_v5 = vadd.f32 %v405_v58, %v404_v55  ;;  %v419_v35 = vrot.slane %v418_v63, 4 }
  0x60   :  { %v387_v6 = vadd.f32 %v386_v60, %v385_v53  ;;  %v400_v7 = vrot.slane %v399_v61, 2  ;;  %v413_v8 = vadd.f32 %v412_v62, %v411_v59  ;;  %v425_v10 = vsel %vm319_vm0, %v186_v47, 0.0 }
  0x61   :  { %v381_v36 = vrot.slane %v380_v1, 1  ;;  %v394_v11 = vadd.f32 %v393_v2, %v392_v57  ;;  %v407_v13 = vrot.slane %v406_v5, 2  ;;  %v420_v15 = vadd.f32 %v419_v35, %v418_v63 }
  0x62   :  { %v388_v16 = vrot.slane %v387_v6, 1  ;;  %v401_v17 = vadd.f32 %v400_v7, %v399_v61  ;;  %v414_v18 = vrot.slane %v413_v8, 2  ;;  %v426_v19 = vrot.slane %v425_v10, 4 }
  0x63   :  { %v382_v20 = vadd.f32 %v381_v36, %v380_v1  ;;  %v395_v21 = vrot.slane %v394_v11, 1  ;;  %v408_v22 = vadd.f32 %v407_v13, %v406_v5  ;;  %v421_v45 = vrot.slane %v420_v15, 2 }
  0x64   :  { %v389_v24 = vadd.f32 %v388_v16, %v387_v6  ;;  %v402_v27 = vrot.slane %v401_v17, 1  ;;  %v415_v28 = vadd.f32 %v414_v18, %v413_v8  ;;  %v427_v29 = vadd.f32 %v426_v19, %v425_v10  ;;  %v752_v6 = vld [vmem:[%s1182_s3] sm:$0x3]  ;;  %s910_s3 = scalar_lea.vmem %s846_s16, 32 }
  0x65   :  { %v396_v9 = vadd.f32 %v395_v21, %v394_v11  ;;  %v409_v30 = vrot.slane %v408_v22, 1  ;;  %v422_v31 = vadd.f32 %v421_v45, %v420_v15  ;;  %v877_v50 = vpack.c.bf16 %v643_v49, %v642_v48  ;;  %872 = vmatpush3.msk.msra.mxu1 %vm319_vm0, %v752_v6  ;;  %v856_v11 = vld [vmem:[%s1183_s4] ss:$0 sm:$0xff]  ;;  %p911_p8 = scmp.ne.s32.totalorder %s846_s16, %s910_s3  ;;  %p916_p10 = scmp.lt.s32.totalorder %s910_s3, %s910_s3 }
  0x66   :  { %v403_v32 = vadd.f32 %v402_v27, %v401_v17  ;;  %v416_v33 = vrot.slane %v415_v28, 1  ;;  %v428_v34 = vrot.slane %v427_v29, 2  ;;  %v590_v46 = vsel %vm576_vm1, %v389_v24, %v382_v20 }
  0x67   :  { %v410_v25 = vadd.f32 %v409_v30, %v408_v22  ;;  %v423_v26 = vrot.slane %v422_v31, 1  ;;  %v591_v37 = vsel %vm578_vm2, %v396_v9, %v590_v46  ;;  %v942_v12 = vmov 0.0|0.0   ;;  %p917_p11 = por %p916_p10, %p915_p9 }
  0x68   :  { %v417_v38 = vadd.f32 %v416_v33, %v415_v28  ;;  %v429_v39 = vadd.f32 %v428_v34, %v427_v29  ;;  %v592_v40 = vsel %vm580_vm3, %v403_v32, %v591_v37  ;;  %876 = vmatprep.subr.bf16.mxu0 %v942_v12  ;;  %v656_v52 = vand.u32 127, %v59_v0 }
  0x69   :  { %v424_v41 = vadd.f32 %v423_v26, %v422_v31  ;;  %v593_v42 = vsel %vm582_vm4, %v410_v25, %v592_v40  ;;  %878 = vmatpush3.bf16.msra.mxu0 %v877_v50  ;;  %vm837_vm12 = vcmask 123904   ;;  %p918_p12 = pnand %p917_p11, %p911_p8 }
  0x6a   :  { %v430_v14 = vrot.slane %v429_v39, 1  ;;  %v594_v23 = vsel %vm584_vm5, %v417_v38, %v593_v42  ;;  %v661_v53 = vadd.s32 4294967288, %v656_v52  ;;  %v659_v58 = vsub.s32 %v656_v52, %v989_v4 }
  0x6b   :  { %v595_v43 = vsel %vm586_vm6, %v424_v41, %v594_v23 }
  0x6c   :  { %v431_v44 = vadd.f32 %v430_v14, %v429_v39  ;;  %v664_v56 = vsub.s32 %v661_v53, %v989_v4  ;;  %v854_v4 = vld [vmem:[%s1181_s2] ss:$0 sm:$0xff] }
  0x6e   :  { %v596_v47 = vsel %vm588_vm7, %v431_v44, %v595_v43 }
  0x6f   :  { %632 = vadd.xlane.f32.xlu0 %v596_v47 }
  0xc3   :  { %v635_v51 = vpop.xlane.xlu1 %634 }
  0xc4   :  { %v640_v59 = vmul.f32 0.00390625, %v635_v51 }
  0xc6   :  { %v671_v63 = vrot.slane %v640_v59, %v659_v58 }
  0xd3   :  { %v631_v55 = vpop.xlane.xlu0 %630 }
  0xd4   :  { %v638_v60 = vmul.f32 0.00390625, %v631_v55 }
  0xd6   :  { %v660_v2 = vrot.slane %v638_v60, %v659_v58 }
  0xea   :  { %v637_v54 = vpop.xlane.xlu1 %636 }
  0xeb   :  { %v641_v57 = vmul.f32 0.00390625, %v637_v54 }
  0xed   :  { %v675_v61 = vrot.slane %v641_v57, %v664_v56 }
  0xef   :  { %v676_v5 = vsel %vm666_vm9, %v675_v61, %v671_v63 }
  0xfc   :  { %v633_v62 = vpop.xlane.xlu0 %632 }
  0xfd   :  { %v639_v1 = vmul.f32 0.00390625, %v633_v62 }
  0xff   :  { %v665_v3 = vrot.slane %v639_v1, %v664_v56 }
 0x101   :  { %v667_v0 = vsel %vm666_vm9, %v665_v3, %v660_v2 }
 0x102   :  { %v677_v35 = vsel %vm576_vm1, %v676_v5, %v667_v0 }
 0x103   :  { %869 = vmatmul.mubr.msk.f32.vlgmr.msra.gmra.mrb[0].mxu0 %vm678_vm10, %v677_v35 }
 0x1d6   :  { %v747_v7 = vpop.f32.mrb[0].mxu0 }
 0x1d7   :  { %v748_v8 = vadd.f32 %v854_v4, %v747_v7  ;;  %v870_v10 = vpop.f32.mrb[1].mxu0 }
 0x1d9   :  { %v751_v36 = vmax.f32 %v748_v8, 0.0 }
 0x1db   :  { %874 = vmatmul.mubr.msk.f32.vlgmr.msra.gmra.mrb[0].mxu1 %vm760_vm11, %v751_v36 }
 0x2ae   :  { %v833_v13 = vpop.f32.mrb[0].mxu1 }
 0x2af   :  { %v834_v15 = vadd.f32 %v856_v11, %v833_v13  ;;  %v875_v16 = vpop.f32.mrb[1].mxu1 }
 0x2b1   :  { %838 = vst.msk [vmem:[#allocation6] sm:$0x3] %vm837_vm12, %v834_v15 }
 0x2b2   :  { %921 = shalt.err (!%p918_p12)
}
 0x2b3   :  { %s922_s18 = scalar_lea.hbm %s1184_s5, 32 }
 0x2b4   :  { %p923_p13 = scmp.ne.s32.totalorder %s1184_s5, %s922_s18  ;;  %p926_p0 = scmp.lt.u32.totalorder %s922_s18, %s1184_s5 }
 0x2b6   :  { %p928_p1 = pnand %p926_p0, %p923_p13 }
 0x2b8   :  { %931 = shalt.err (!%p928_p1)
}
 0x2b9   :  { %848 = dma.vmem_to_hbm [thread:$0]  %s846_s16, 32, %s1184_s5, [#allocation5]  }
 0x2ba   :  { %934 = dma.done.wait [#allocation5], 32  }
 0x2bb   :  { %935 = vsyncadd [#allocation5], 4294967264 }
 0x2bc   :  { %852 = vsyncpa [#allocation4], 1 }
 0x2bd   :  { %853 = vsyncpa [#allocation5], 1 }

</bundles_post_ra>
